<compile_context>
chip_gen: v7x
topology: tpu7x:2x2x1
jax: 0.10.0
libtpu: 0.0.40
codegen_flags: <defaults>
</compile_context>

<pallas_src>
import functools

import numpy as np
import jax
import jax.numpy as jnp
from jax.experimental import pallas as pl
from jax.experimental.pallas import tpu as pltpu


def _block_kernel(x_ref, halo_ref, w1_ref, w2_ref, shift_ref, out_ref, *, matmul_dtype):
    # x_ref     : (C, T)         one batch element / one L tile (C on sublanes, L on lanes)
    # halo_ref  : (C, 4)         [x[l0-2], x[l0-1], x[l0+T], x[l0+T+1]], zeros at global edges
    # w1_ref    : (Cout, 3*C)    BN1-scale-folded fused taps [W0t | W1t | W2t] (matmul_dtype)
    # w2_ref    : (Cout, 3*Cout) BN2-scale-folded fused taps (matmul_dtype)
    # shift_ref : (2, Cout, 1)   folded BN shifts (row 0: BN1, row 1: BN2), f32
    # out_ref   : (Cout, T)
    C, T = x_ref.shape

    x = x_ref[...]                            # f32, kept for the residual add
    xm = x.astype(matmul_dtype)               # cast once for all MXU operands
    hm = halo_ref[...].astype(matmul_dtype)   # (C, 4)
    w1 = w1_ref[...]
    w2 = w2_ref[...]
    shift1 = shift_ref[0]                     # (Cout, 1)
    shift2 = shift_ref[1]

    j = pl.program_id(1)
    not_first = (j > 0).astype(jnp.float32)
    not_last = (j < pl.num_programs(1) - 1).astype(jnp.float32)

    if T % 128 == 0:
        lane = jax.lax.broadcasted_iota(jnp.int32, (1, T), 1)

        def shifted(a, prev_col, next_col):
            # left[:, l] = a[:, l-1] (prev_col at l=0); right[:, l] = a[:, l+1] (next_col at l=T-1)
            left = jnp.where(lane == 0, prev_col, pltpu.roll(a, shift=1, axis=1))
            right = jnp.where(lane == T - 1, next_col, pltpu.roll(a, shift=T - 1, axis=1))
            return left, right
    else:
        # Tiny demo widths (< 1 lane group): fall back to slice+concatenate.
        def shifted(a, prev_col, next_col):
            left = jnp.concatenate([prev_col, a[:, : T - 1]], axis=1)
            right = jnp.concatenate([a[:, 1:], next_col], axis=1)
            return left, right

    def conv3(a, prev_col, next_col, w):
        left, right = shifted(a, prev_col, next_col)
        stacked = jnp.concatenate([left, a, right], axis=0)        # (3*Cin, T), K = 3*Cin
        return jnp.dot(w, stacked, preferred_element_type=jnp.float32)

    # ---- conv1 (+ folded BN1) + ReLU over this tile ----
    mid = jnp.maximum(conv3(xm, hm[:, 1:2], hm[:, 2:3], w1) + shift1, 0.0)

    # ---- mid at the tile-boundary positions l0-1 and l0+T (conv2's halo) ----
    hcols = jnp.concatenate([
        jnp.concatenate([hm[:, 0:1], xm[:, T - 1:T]], axis=1),     # a[l-1]: x[l0-2], x[l0+T-1]
        jnp.concatenate([hm[:, 1:2], hm[:, 2:3]], axis=1),         # a[l]  : x[l0-1], x[l0+T]
        jnp.concatenate([xm[:, 0:1], hm[:, 3:4]], axis=1),         # a[l+1]: x[l0],   x[l0+T+1]
    ], axis=0)                                                     # (3*C, 2)
    mid_halo = jnp.maximum(
        jnp.dot(w1, hcols, preferred_element_type=jnp.float32) + shift1, 0.0)   # (Cout, 2)
    # conv2 zero-pads only at the *global* sequence edges, not at interior tile edges.
    mid_prev = (mid_halo[:, 0:1] * not_first).astype(matmul_dtype)
    mid_next = (mid_halo[:, 1:2] * not_last).astype(matmul_dtype)

    # ---- conv2 (+ folded BN2 shift fused with the residual) + ReLU ----
    out = conv3(mid.astype(matmul_dtype), mid_prev, mid_next, w2) + (shift2 + x)
    out_ref[...] = jnp.maximum(out, 0.0).astype(out_ref.dtype)


def _pick_tile_l(L):
    """Largest lane-dense tile that divides L and still leaves >= 2 grid steps along L."""
    for cand in (2048, 1024, 512, 256, 128):
        if L % cand == 0 and L // cand >= 2:
            return cand
    for cand in (2048, 1024, 512, 256, 128):
        if L % cand == 0:
            return cand
    return L   # tiny / non-128-multiple L: single tile (masked store; demo only)


def simple_block_1d(x, w1, w2, s1, b1, s2, b2, *, matmul_dtype=jnp.float32, tile_l=None):
    """ResNet-1D basic block (stride=1, no downsample), NCL layout.

    x : (N, C, L) float32.   w1, w2 : (3, Cin, Cout) conv taps.
    s*, b* : folded inference BatchNorm scale/shift (gamma/sqrt(var+eps), beta - mean*scale).
    """
    N, C, L = x.shape
    Cout = w1.shape[2]
    assert Cout == C, "stride=1 / downsample=None requires inplanes == planes"

    if tile_l is None:
        tile_l = _pick_tile_l(L)
    if L % tile_l != 0:
        raise ValueError(f"tile_l={tile_l} must divide L={L}")
    num_tiles = L // tile_l

    # Fold BN scale into the conv weights and fuse the 3 taps along the contraction dim:
    # w*f[o, k*C + i] = w*[k, i, o] * s*[o]  ->  one (Cout, 3C) x (3C, T) MXU matmul per conv.
    w1f = jnp.transpose(w1 * s1[None, None, :], (2, 0, 1)).reshape(Cout, 3 * C).astype(matmul_dtype)
    w2f = jnp.transpose(w2 * s2[None, None, :], (2, 0, 1)).reshape(Cout, 3 * Cout).astype(matmul_dtype)
    shifts = jnp.stack([b1, b2]).reshape(2, Cout, 1).astype(jnp.float32)

    # Per-tile halo columns (2 each side; receptive field of the two stacked conv3's is 5):
    # zeros outside [0, L) == conv1's zero padding at the global edges.
    xp = jnp.pad(x, ((0, 0), (0, 0), (2, 2)))
    starts = np.arange(num_tiles) * tile_l
    cols = np.stack([starts, starts + 1, starts + tile_l + 2, starts + tile_l + 3], axis=1)
    halo = jnp.transpose(xp[:, :, cols], (0, 2, 1, 3))             # (N, num_tiles, C, 4)

    kernel = functools.partial(_block_kernel, matmul_dtype=matmul_dtype)

    return pl.pallas_call(
        kernel,
        out_shape=jax.ShapeDtypeStruct((N, Cout, L), x.dtype),
        grid_spec=pltpu.PrefetchScalarGridSpec(
            num_scalar_prefetch=0,
            grid=(N, num_tiles),
            in_specs=[
                pl.BlockSpec((pl.Squeezed(), C, tile_l), lambda n, j: (n, 0, j)),
                pl.BlockSpec((pl.Squeezed(), pl.Squeezed(), C, 4), lambda n, j: (n, j, 0, 0)),
                pl.BlockSpec((Cout, 3 * C), lambda n, j: (0, 0)),
                pl.BlockSpec((Cout, 3 * Cout), lambda n, j: (0, 0)),
                pl.BlockSpec((2, Cout, 1), lambda n, j: (0, 0, 0)),
            ],
            out_specs=pl.BlockSpec((pl.Squeezed(), Cout, tile_l), lambda n, j: (n, 0, j)),
        ),
        compiler_params=pltpu.CompilerParams(
            # Both axes independent: megacore shards them; the L axis gives pipelining depth.
            dimension_semantics=("parallel", "parallel"),
            # Explicit VMEM budget (v7x has only 64 MiB physical / 32 MiB scoped default).
            vmem_limit_bytes=32 * 1024 * 1024,
        ),
    )(x, halo, w1f, w2f, shifts)


def _reference(x, w1, w2, s1, b1, s2, b2):
    """Pure-JAX reference using lax.conv (same folded-BN semantics)."""
    dn = ('NCH', 'OIH', 'NCH')
    p = jax.lax.Precision.HIGHEST
    w1_t = jnp.transpose(w1, (2, 1, 0))   # (K, Cin, Cout) -> (Cout, Cin, K)
    w2_t = jnp.transpose(w2, (2, 1, 0))
    mid = jax.lax.conv_general_dilated(x, w1_t, (1,), ((1, 1),), dimension_numbers=dn,
                                       precision=p)
    mid = jnp.maximum(mid * s1[None, :, None] + b1[None, :, None], 0.0)
    out = jax.lax.conv_general_dilated(mid, w2_t, (1,), ((1, 1),), dimension_numbers=dn,
                                       precision=p)
    out = out * s2[None, :, None] + b2[None, :, None] + x
    return jnp.maximum(out, 0.0)


def _make_params(key, C):
    ks = jax.random.split(key, 10)
    wscale = 1.0 / np.sqrt(3 * C)
    w1 = jax.random.normal(ks[0], (3, C, C), jnp.float32) * wscale
    w2 = jax.random.normal(ks[1], (3, C, C), jnp.float32) * wscale
    eps = 1e-5
    g1 = 1.0 + 0.1 * jax.random.normal(ks[2], (C,), jnp.float32)
    be1 = 0.1 * jax.random.normal(ks[3], (C,), jnp.float32)
    m1 = 0.1 * jax.random.normal(ks[4], (C,), jnp.float32)
    v1 = jnp.abs(1.0 + 0.1 * jax.random.normal(ks[5], (C,), jnp.float32))
    g2 = 1.0 + 0.1 * jax.random.normal(ks[6], (C,), jnp.float32)
    be2 = 0.1 * jax.random.normal(ks[7], (C,), jnp.float32)
    m2 = 0.1 * jax.random.normal(ks[8], (C,), jnp.float32)
    v2 = jnp.abs(1.0 + 0.1 * jax.random.normal(ks[9], (C,), jnp.float32))
    s1 = g1 / jnp.sqrt(v1 + eps)
    b1 = be1 - m1 * s1
    s2 = g2 / jnp.sqrt(v2 + eps)
    b2 = be2 - m2 * s2
    return w1, w2, s1, b1, s2, b2


if __name__ == "__main__":
    root = jax.random.PRNGKey(0)

    def run_case(N, C, L, tile_l, matmul_dtype, rtol, atol, key):
        kx, kp = jax.random.split(key)
        x = jax.random.normal(kx, (N, C, L), jnp.float32)
        params = _make_params(kp, C)
        ref = _reference(x, *params)
        out = simple_block_1d(x, *params, matmul_dtype=matmul_dtype, tile_l=tile_l)
        out = jax.block_until_ready(out)
        np.testing.assert_allclose(np.asarray(out), np.asarray(ref), rtol=rtol, atol=atol)

    k1, k2, k3 = jax.random.split(root, 3)

    # 1) Small demo shape (single L tile; masked store accepted — not a benchmark shape).
    run_case(2, 8, 16, None, jnp.float32, 1e-4, 1e-4, k1)

    # 2) Tiled path: layer1 width C=64, L=1024 split into 4 lane-dense 256-wide tiles
    #    (exercises interior halos + roll-based shifts), exact f32 semantics.
    run_case(2, 64, 1024, 256, jnp.float32, 1e-3, 1e-3, k2)

    # 3) bf16 MXU-operand fast path (f32 accumulation; BN/ReLU/residual stay f32).
    run_case(2, 64, 1024, 256, jnp.bfloat16, 5e-2, 5e-2, k3)

    print("KERNEL_OK")
</pallas_src>

<mosaic_0001>
module attributes {stable_mosaic.version = 11 : i64} {
  func.func @_block_kernel(%arg0: i32, %arg1: i32, %arg2: memref<1x8x16xf32, #tpu.memory_space<vmem>>, %arg3: memref<1x1x8x4xf32, #tpu.memory_space<vmem>>, %arg4: memref<8x24xf32, #tpu.memory_space<vmem>>, %arg5: memref<8x24xf32, #tpu.memory_space<vmem>>, %arg6: memref<2x8x1xf32, #tpu.memory_space<vmem>>, %arg7: memref<1x8x16xf32, #tpu.memory_space<vmem>>) attributes {dimension_semantics = [#tpu.dimension_semantics<parallel>, #tpu.dimension_semantics<parallel>], iteration_bounds = array<i64: 2, 1>, scalar_prefetch = 0 : i64, scratch_operands = 0 : i64, tpu.core_type = #tpu.core_type<tc>, window_params = [{transform_indices = @transform_0, window_bounds = array<i64: 1, 8, 16>}, {transform_indices = @transform_1, window_bounds = array<i64: 1, 1, 8, 4>}, {pipeline_mode = #tpu.pipeline_mode<synchronous>, transform_indices = @transform_2, window_bounds = array<i64: 8, 24>}, {pipeline_mode = #tpu.pipeline_mode<synchronous>, transform_indices = @transform_3, window_bounds = array<i64: 8, 24>}, {pipeline_mode = #tpu.pipeline_mode<synchronous>, transform_indices = @transform_4, window_bounds = array<i64: 2, 8, 1>}, {transform_indices = @transform_5, window_bounds = array<i64: 1, 8, 16>}]} {
    %c0 = arith.constant 0 : index
    %c0_0 = arith.constant 0 : index
    %c0_1 = arith.constant 0 : index
    %0 = vector.load %arg2[%c0, %c0_0, %c0_1] : memref<1x8x16xf32, #tpu.memory_space<vmem>>, vector<1x8x16xf32>
    %1 = vector.shape_cast %0 : vector<1x8x16xf32> to vector<8x16xf32>
    %c0_2 = arith.constant 0 : index
    %c0_3 = arith.constant 0 : index
    %c0_4 = arith.constant 0 : index
    %c0_5 = arith.constant 0 : index
    %2 = vector.load %arg3[%c0_2, %c0_3, %c0_4, %c0_5] : memref<1x1x8x4xf32, #tpu.memory_space<vmem>>, vector<1x1x8x4xf32>
    %3 = vector.shape_cast %2 : vector<1x1x8x4xf32> to vector<8x4xf32>
    %c0_6 = arith.constant 0 : index
    %c0_7 = arith.constant 0 : index
    %4 = vector.load %arg4[%c0_6, %c0_7] : memref<8x24xf32, #tpu.memory_space<vmem>>, vector<8x24xf32>
    %c0_8 = arith.constant 0 : index
    %c0_9 = arith.constant 0 : index
    %5 = vector.load %arg5[%c0_8, %c0_9] : memref<8x24xf32, #tpu.memory_space<vmem>>, vector<8x24xf32>
    %c0_10 = arith.constant 0 : index
    %c0_11 = arith.constant 0 : index
    %c0_12 = arith.constant 0 : index
    %6 = vector.load %arg6[%c0_10, %c0_11, %c0_12] : memref<2x8x1xf32, #tpu.memory_space<vmem>>, vector<1x8x1xf32>
    %7 = vector.shape_cast %6 : vector<1x8x1xf32> to vector<8x1xf32>
    %c1 = arith.constant 1 : index
    %c0_13 = arith.constant 0 : index
    %c0_14 = arith.constant 0 : index
    %8 = vector.load %arg6[%c1, %c0_13, %c0_14] : memref<2x8x1xf32, #tpu.memory_space<vmem>>, vector<1x8x1xf32>
    %9 = vector.shape_cast %8 : vector<1x8x1xf32> to vector<8x1xf32>
    %c0_i32 = arith.constant 0 : i32
    %10 = arith.cmpi sgt, %arg1, %c0_i32 : i32
    %11 = arith.extui %10 : i1 to i32
    %12 = arith.sitofp %11 : i32 to f32
    %c0_i32_15 = arith.constant 0 : i32
    %13 = arith.cmpi slt, %arg1, %c0_i32_15 : i32
    %14 = arith.extui %13 : i1 to i32
    %15 = arith.sitofp %14 : i32 to f32
    %16 = vector.extract_strided_slice %3 {offsets = [0, 1], sizes = [8, 1], strides = [1, 1]} : vector<8x4xf32> to vector<8x1xf32>
    %17 = vector.extract_strided_slice %3 {offsets = [0, 2], sizes = [8, 1], strides = [1, 1]} : vector<8x4xf32> to vector<8x1xf32>
    %18 = vector.extract_strided_slice %1 {offsets = [0, 0], sizes = [8, 15], strides = [1, 1]} : vector<8x16xf32> to vector<8x15xf32>
    %19 = tpu.concatenate %16, %18 in 1 : vector<8x1xf32>, vector<8x15xf32> -> vector<8x16xf32>
    %20 = vector.extract_strided_slice %1 {offsets = [0, 1], sizes = [8, 15], strides = [1, 1]} : vector<8x16xf32> to vector<8x15xf32>
    %21 = tpu.concatenate %20, %17 in 1 : vector<8x15xf32>, vector<8x1xf32> -> vector<8x16xf32>
    %22 = tpu.concatenate %19, %1, %21 in 0 : vector<8x16xf32>, vector<8x16xf32>, vector<8x16xf32> -> vector<24x16xf32>
    %cst = arith.constant dense<0.000000e+00> : vector<8x16xf32>
    %23 = tpu.matmul %4, %22, %cst {dimension_numbers = #tpu.dot_dimension_numbers<[1], [0], [0], [1], [0, 0, 1, 1], [], []>} : vector<8x24xf32>, vector<24x16xf32>, vector<8x16xf32> -> vector<8x16xf32>
    %24 = vector.broadcast %7 : vector<8x1xf32> to vector<8x16xf32>
    %25 = arith.addf %23, %24 : vector<8x16xf32>
    %cst_16 = arith.constant 0.000000e+00 : f32
    %26 = vector.broadcast %cst_16 : f32 to vector<8x16xf32>
    %27 = arith.maximumf %25, %26 : vector<8x16xf32>
    %28 = vector.extract_strided_slice %3 {offsets = [0, 0], sizes = [8, 1], strides = [1, 1]} : vector<8x4xf32> to vector<8x1xf32>
    %29 = vector.extract_strided_slice %1 {offsets = [0, 15], sizes = [8, 1], strides = [1, 1]} : vector<8x16xf32> to vector<8x1xf32>
    %30 = tpu.concatenate %28, %29 in 1 : vector<8x1xf32>, vector<8x1xf32> -> vector<8x2xf32>
    %31 = vector.extract_strided_slice %3 {offsets = [0, 1], sizes = [8, 1], strides = [1, 1]} : vector<8x4xf32> to vector<8x1xf32>
    %32 = vector.extract_strided_slice %3 {offsets = [0, 2], sizes = [8, 1], strides = [1, 1]} : vector<8x4xf32> to vector<8x1xf32>
    %33 = tpu.concatenate %31, %32 in 1 : vector<8x1xf32>, vector<8x1xf32> -> vector<8x2xf32>
    %34 = vector.extract_strided_slice %1 {offsets = [0, 0], sizes = [8, 1], strides = [1, 1]} : vector<8x16xf32> to vector<8x1xf32>
    %35 = vector.extract_strided_slice %3 {offsets = [0, 3], sizes = [8, 1], strides = [1, 1]} : vector<8x4xf32> to vector<8x1xf32>
    %36 = tpu.concatenate %34, %35 in 1 : vector<8x1xf32>, vector<8x1xf32> -> vector<8x2xf32>
    %37 = tpu.concatenate %30, %33, %36 in 0 : vector<8x2xf32>, vector<8x2xf32>, vector<8x2xf32> -> vector<24x2xf32>
    %cst_17 = arith.constant dense<0.000000e+00> : vector<8x2xf32>
    %38 = tpu.matmul %4, %37, %cst_17 {dimension_numbers = #tpu.dot_dimension_numbers<[1], [0], [0], [1], [0, 0, 1, 1], [], []>} : vector<8x24xf32>, vector<24x2xf32>, vector<8x2xf32> -> vector<8x2xf32>
    %39 = vector.broadcast %7 : vector<8x1xf32> to vector<8x2xf32>
    %40 = arith.addf %38, %39 : vector<8x2xf32>
    %cst_18 = arith.constant 0.000000e+00 : f32
    %41 = vector.broadcast %cst_18 : f32 to vector<8x2xf32>
    %42 = arith.maximumf %40, %41 : vector<8x2xf32>
    %43 = vector.extract_strided_slice %42 {offsets = [0, 0], sizes = [8, 1], strides = [1, 1]} : vector<8x2xf32> to vector<8x1xf32>
    %44 = vector.broadcast %12 : f32 to vector<8x1xf32>
    %45 = arith.mulf %43, %44 : vector<8x1xf32>
    %46 = vector.extract_strided_slice %42 {offsets = [0, 1], sizes = [8, 1], strides = [1, 1]} : vector<8x2xf32> to vector<8x1xf32>
    %47 = vector.broadcast %15 : f32 to vector<8x1xf32>
    %48 = arith.mulf %46, %47 : vector<8x1xf32>
    %49 = vector.extract_strided_slice %27 {offsets = [0, 0], sizes = [8, 15], strides = [1, 1]} : vector<8x16xf32> to vector<8x15xf32>
    %50 = tpu.concatenate %45, %49 in 1 : vector<8x1xf32>, vector<8x15xf32> -> vector<8x16xf32>
    %51 = vector.extract_strided_slice %27 {offsets = [0, 1], sizes = [8, 15], strides = [1, 1]} : vector<8x16xf32> to vector<8x15xf32>
    %52 = tpu.concatenate %51, %48 in 1 : vector<8x15xf32>, vector<8x1xf32> -> vector<8x16xf32>
    %53 = tpu.concatenate %50, %27, %52 in 0 : vector<8x16xf32>, vector<8x16xf32>, vector<8x16xf32> -> vector<24x16xf32>
    %cst_19 = arith.constant dense<0.000000e+00> : vector<8x16xf32>
    %54 = tpu.matmul %5, %53, %cst_19 {dimension_numbers = #tpu.dot_dimension_numbers<[1], [0], [0], [1], [0, 0, 1, 1], [], []>} : vector<8x24xf32>, vector<24x16xf32>, vector<8x16xf32> -> vector<8x16xf32>
    %55 = vector.broadcast %9 : vector<8x1xf32> to vector<8x16xf32>
    %56 = arith.addf %55, %1 : vector<8x16xf32>
    %57 = arith.addf %54, %56 : vector<8x16xf32>
    %cst_20 = arith.constant 0.000000e+00 : f32
    %58 = vector.broadcast %cst_20 : f32 to vector<8x16xf32>
    %59 = arith.maximumf %57, %58 : vector<8x16xf32>
    %c0_21 = arith.constant 0 : index
    %c0_22 = arith.constant 0 : index
    %c0_23 = arith.constant 0 : index
    %60 = vector.load %arg7[%c0_21, %c0_22, %c0_23] : memref<1x8x16xf32, #tpu.memory_space<vmem>>, vector<1x8x16xf32>
    %61 = vector.shape_cast %60 : vector<1x8x16xf32> to vector<8x16xf32>
    %62 = vector.shape_cast %59 : vector<8x16xf32> to vector<1x8x16xf32>
    tpu.vector_store %arg7[%c0_21, %c0_22, %c0_23], %62 {strides = array<i32>} : memref<1x8x16xf32, #tpu.memory_space<vmem>>, vector<1x8x16xf32>,
    return
  }
  func.func @transform_0(%arg0: i32, %arg1: i32) -> (i32, i32, i32) {
    %c0_i32 = arith.constant 0 : i32
    %c0_i32_0 = arith.constant 0 : i32
    return %arg0, %c0_i32, %arg1 : i32, i32, i32
  }
  func.func @transform_1(%arg0: i32, %arg1: i32) -> (i32, i32, i32, i32) {
    %c0_i32 = arith.constant 0 : i32
    %c0_i32_0 = arith.constant 0 : i32
    %c0_i32_1 = arith.constant 0 : i32
    return %arg0, %arg1, %c0_i32, %c0_i32_0 : i32, i32, i32, i32
  }
  func.func @transform_2(%arg0: i32, %arg1: i32) -> (i32, i32) {
    %c0_i32 = arith.constant 0 : i32
    %c0_i32_0 = arith.constant 0 : i32
    %c0_i32_1 = arith.constant 0 : i32
    return %c0_i32, %c0_i32_0 : i32, i32
  }
  func.func @transform_3(%arg0: i32, %arg1: i32) -> (i32, i32) {
    %c0_i32 = arith.constant 0 : i32
    %c0_i32_0 = arith.constant 0 : i32
    %c0_i32_1 = arith.constant 0 : i32
    return %c0_i32, %c0_i32_0 : i32, i32
  }
  func.func @transform_4(%arg0: i32, %arg1: i32) -> (i32, i32, i32) {
    %c0_i32 = arith.constant 0 : i32
    %c0_i32_0 = arith.constant 0 : i32
    %c0_i32_1 = arith.constant 0 : i32
    %c0_i32_2 = arith.constant 0 : i32
    return %c0_i32, %c0_i32_0, %c0_i32_1 : i32, i32, i32
  }
  func.func @transform_5(%arg0: i32, %arg1: i32) -> (i32, i32, i32) {
    %c0_i32 = arith.constant 0 : i32
    %c0_i32_0 = arith.constant 0 : i32
    return %arg0, %c0_i32, %arg1 : i32, i32, i32
  }
}

</mosaic_0001>

<bundles_post_ra>
// kernel: tpu_custom_call.1
= control target key start
LH: loop header
LB: loop body
LE: loop exit
PB: predicated region body
PF: predicated region fallthrough
CT: control target
= control target key end

     0   :  { %10 = vsyncpa [#allocation3], 0  ;;  %s1073_s0 = inlined_call_operand.vmem [shape: f32[2,8,16], index: 0, kind: input, shape index: {}]   ;;  %s1074_s1 = inlined_call_operand.vmem [shape: f32[2,1,8,4], index: 1, kind: input, shape index: {}]   ;;  %s1075_s2 = inlined_call_operand.vmem [shape: f32[8,24], index: 2, kind: input, shape index: {}]   ;;  %s1076_s3 = inlined_call_operand.vmem [shape: f32[8,24], index: 3, kind: input, shape index: {}]   ;;  %s1077_s4 = inlined_call_operand.vmem [shape: f32[2,8,1], index: 4, kind: input, shape index: {}]   ;;  %s1078_s5 = inlined_call_operand.hbm [shape: f32[2,8,16], index: 5, kind: output, shape index: {}]  }
   0x1   :  { %12 = vsyncpa [#allocation3 + $0x1], 0  ;;  %s915_s18 = smov 0   ;;  %s917_s19 = smov 0  }
   0x2   :  { %s919_s20 = smov 0   ;;  %s921_s21 = smov 0  }
   0x3   :  { %s923_s22 = smov 0   ;;  %s925_s23 = smov 0  }
   0x4 LB: > { %s663_s24 = sadd.s32 4294967295, %s872_s23   ;;  %s664_s25 = sadd.s32 4294967294, %s872_s23   ;;  %s872_s23 = sphi %s925_s23, %s18_s23   ;;  %s868_s22 = sphi %s923_s22, %s1085_s22   ;;  %s864_s21 = sphi %s921_s21, %s1084_s21   ;;  %s860_s20 = sphi %s919_s20, %s1083_s20   ;;  %s856_s19 = sphi %s917_s19, %s1082_s19   ;;  %s852_s18 = sphi %s915_s18, %s1081_s18  }
   0x5   : > { %s30_s26 = sadd.s32 1, %s868_s22  ;;  %s158_s27 = sadd.s32 1, %s860_s20 }
   0x6   : > { %p32_p0 = scmp.ge.s32.totalorder %s30_s26, 2  ;;  %p168_p1 = scmp.ne.s32.totalorder %s860_s20, %s856_s19 }
   0x7   : > { %p169_p2 = scmp.eq.s32.totalorder %s663_s24, 1  ;;  %p174_p3 = scmp.ne.s32.totalorder %s856_s19, %s852_s18 }
   0x8   : > { %s1087_s26 = smov (%p32_p0, %s30_s26), 0  ;;  %p175_p5 = scmp.eq.s32.totalorder %s664_s25, 1 }
   0x9   : > { %p955_p4 = por %p169_p2, %p168_p1  ;;  %s153_s29 = ssub.s32 %s868_s22, %s1087_s26 }
   0xa   : > { %p667_p6 = scmp.ge.s32.totalorder %s872_s23, 1  ;;  %p156_p7 = scmp.eq.s32.totalorder %s153_s29, 0 }
   0xb   : > { %p962_p8 = por %p175_p5, %p174_p3  ;;  %p222_p9 = scmp.lt.s32.totalorder %s872_s23, 3 }
   0xc   : > { %s968_s6 = scalar_select %p156_p7, %s860_s20, %s158_s27  }
   0xd   : > { %p223_p10 = pnand %p667_p6, %p222_p9 }
   0xe   : > { %p259_p11 = scmp.lt.s32.totalorder (!%p223_p10), %s864_s21, 1  ;;  %v874_v0 = vmov (!%p223_p10), 0.0|0.0   ;;  %vm875_vm0 = vmmov (!%p223_p10), 0   ;;  %v876_v1 = vmov (!%p223_p10), 0.0   ;;  %s877_s15 = smov (!%p223_p10), 127   ;;  %v879_v4 = vmov (!%p223_p10), 0  }
   0xf   : > { %226 = sbr.rel (%p223_p10) target bundleno = 723 (0x2d3), region = 40  ;;  %721 = vmatprep.subr.bf16.mxu1 (!%p223_p10), %v874_v0  ;;  %718 = vmatprep.subr.bf16.mxu0 (!%p223_p10), %v874_v0  ;;  %s878_s16 = smov (!%p223_p10), 114   ;;  %v277_v5 = vld [vmem:[%s1077_s4] sm:$0xff] (!%p223_p10)  ;;  %vm294_vm1 = vcmask (!%p223_p10), 7168   ;;  %vm302_vm2 = vcmask (!%p223_p10), 121856   ;;  %vm309_vm3 = vcmask (!%p223_p10), 195584  }
  0x10   : > { %697 = vmatprep.mubr.msk.f32.mxu0 (!%p223_p10), %vm875_vm0, %v876_v1  ;;  %706 = vmatprep.mubr.msk.f32.mxu1 (!%p223_p10), %vm875_vm0, %v876_v1  ;;  %s880_s17 = smov (!%p223_p10), 1   ;;  %s881_s24 = smov (!%p223_p10), 126   ;;  %v275_v16 = vld [vmem:[%s1075_s2] sm:$0xff] (!%p223_p10)  ;;  %v671_v29 = vld [vmem:[%s1077_s4 + $0x8] sm:$0xff] (!%p223_p10)  ;;  %vm560_vm4 = vcmask (!%p223_p10), 130048  }
  0x11   : > { %792 = vset.pattern.permute.xlu0 (!%p223_p10), %v879_v4  ;;  %793 = vset.pattern.permute.xlu1 (!%p223_p10), %v879_v4  ;;  %s882_s25 = smov (!%p223_p10), 13   ;;  %s883_s9 = smov (!%p223_p10), 14   ;;  %v276_v35 = vld [vmem:[%s1076_s3] sm:$0xff] (!%p223_p10) }
  0x16   : > { %s260_s7 = scalar_select %p259_p11, %s864_s21, 1 }
  0x18   : > { %s669_s8 = sshll.u32 %s260_s7, 3 }
  0x19   : > { %s272_s11 = scalar_lea.vmem %s1074_s1, %s669_s8  ;;  %s265_s14 = scalar_lea.vmem %s1073_s0, %s669_s8 }
  0x1a   : > { %v274_v2 = vld [vmem:[%s272_s11] sm:$0xff] }
  0x1b   : > { %v982_v3 = vld [vmem:[%s265_s14] sm:$0xff]  ;;  %287 = vrot.lane.b32.xlu0 %v274_v2, %s877_s15  ;;  %s256_s14 = sand.u32 1, %s856_s19  }
  0x1c   : > { %384 = vrot.lane.b32.xlu1 %v982_v3, %s878_s16  ;;  %s676_s16 = sshll.u32 %s864_s21, 7  ;;  %s563_s7 = scalar_lea.sflag [#allocation3], %s256_s14 }
  0x1d   : > { %s1026_s29 = scalar_lea.hbm %s1078_s5, %s676_s16  ;;  %s884_s21 = smov [#allocation2]  }
  0x1f   : > { %291 = vrot.lane.b32.xlu0 %v982_v3, %s880_s17 }
  0x20   : > { %296 = vrot.lane.b32.xlu1 %v982_v3, %s877_s15 }
  0x23   : > { %299 = vrot.lane.b32.xlu0 %v274_v2, %s882_s25 }
  0x24   : > { %388 = vrot.lane.b32.xlu1 %v274_v2, %s881_s24 }
  0x27   : > { %306 = vperm.xlu0 %792, %v277_v5  }
  0x8d   : > { %v288_v6 = vpop.permute.xlu0 %287 }
  0x8e   : > { %v385_v7 = vpop.permute.xlu1 %384 }
  0x8f   : > { %v387_v8 = vsel %vm294_vm1, %v274_v2, %v385_v7 }
  0x90   : > { %v722_v9 = vpack.c.bf16 %v288_v6, %v387_v8 }
  0x91   : > { %v292_v10 = vpop.permute.xlu0 %291 }
  0x92   : > { %723 = vmatpush3.bf16.msra.mxu1 %v722_v9  ;;  %v297_v11 = vpop.permute.xlu1 %296  ;;  %v295_v12 = vsel %vm294_vm1, %v288_v6, %v292_v10 }
  0x93   : > { %704 = vmatprep.subr.mxu1 %v876_v1  ;;  %v719_v13 = vpack.c.bf16 %v982_v3, %v295_v12 }
  0x95   : > { %720 = vmatpush3.bf16.msra.mxu0 %v719_v13  ;;  %v300_v15 = vpop.permute.xlu0 %299 }
  0x96   : > { %v389_v14 = vpop.permute.xlu1 %388  ;;  %695 = vmatprep.subr.mxu0 %v876_v1  ;;  %v303_v17 = vsel %vm302_vm2, %v297_v11, %v300_v15 }
  0x97   : > { %v391_v18 = vsel %vm294_vm1, %v982_v3, %v389_v14 }
  0x98   : > { %705 = vmatpush3.msra.mxu1 %v391_v18 }
  0x99   : > { %707 = vmatmul.mubr.msk.f32.vlgmr.msra.gmra.mrb[0].mxu1 %vm309_vm3, %v275_v16  ;;  %696 = vmatpush3.msra.mxu0 %v303_v17 }
  0x9a   : > { %698 = vmatmul.mubr.msk.f32.vlgmr.msra.gmra.mrb[0].mxu0 %vm309_vm3, %v275_v16  ;;  %724 = vmatprep.subr.bf16.mxu0 %v874_v0 }
  0x9b   : > { %715 = vmatprep.mubr.msk.f32.mxu0 %vm875_vm0, %v876_v1 }
  0xa6   : > { %v307_v19 = vpop.permute.xlu0 %306 }
 0x16c   : > { %v458_v20 = vpop.f32.mrb[0].mxu1 }
 0x16d   : > { %v459_v21 = vadd.f32 %v458_v20, %v307_v19  ;;  %v708_v22 = vpop.f32.mrb[1].mxu1  ;;  %v379_v23 = vpop.f32.mrb[0].mxu0 }
 0x16e   : > { %v380_v24 = vadd.f32 %v379_v23, %v307_v19  ;;  %v699_v26 = vpop.f32.mrb[1].mxu0 }
 0x16f   : > { %v462_v25 = vmax.f32 %v459_v21, 0.0 }
 0x170   : > { %v383_v27 = vmax.f32 %v380_v24, 0.0 }
 0x171   : > { %v464_v28 = vmul.f32 0.0, %v462_v25 }
 0x172   : > { %468 = vrot.lane.b32.xlu1 %v383_v27, %s880_s17 }
 0x173   : > { %476 = vrot.lane.b32.xlu0 %v464_v28, %s883_s9  ;;  %s798_s9 = sshll.u32 %s884_s21, 4  ;;  %s799_s9 = int_to_ptr.vmem [resolvable:$false] %s798_s9 }
 0x174   : > { %s800_s10 = scalar_lea.vmem %s799_s9, 256 }
 0x176   : > { %472 = vrot.lane.b32.xlu1 %v383_v27, %s877_s15  ;;  %s668_s15 = sshll.u32 %s256_s14, 3 }
 0x177   : > { %s258_s17 = scalar_lea.vmem [#allocation2], %s668_s15 }
 0x178   : > { %s577_s24 = sshll.u32 %s258_s17, 4  ;;  %s1028_s24 = int_to_ptr.vmem [resolvable:$true] %s577_s24 }
 0x179   : > { %s794_s8 = scalar_lea.vmem %s1028_s24, 128  ;;  %p801_p1 = scmp.lt.s32.totalorder %s1028_s24, %s799_s9 }
 0x17a   : > { %482 = vperm.xlu1 %793, %v671_v29   ;;  %p795_p12 = scmp.ne.s32.totalorder %s1028_s24, %s794_s8  ;;  %p802_p2 = scmp.lt.s32.totalorder %s800_s10, %s794_s8 }
 0x17c   : > { %p796_p13 = pnand %p795_p12, %p955_p4  ;;  %p803_p3 = por %p802_p2, %p801_p1 }
 0x17e   : > { %p797_p0 = pneg %p796_p13 }
 0x180   : > { %p804_p5 = pnand %p803_p3, %p797_p0 }
 0x1e4   : > { %v469_v30 = vpop.permute.xlu1 %468 }
 0x1e5   : > { %v471_v31 = vsel %vm294_vm1, %v464_v28, %v469_v30  ;;  %v477_v34 = vpop.permute.xlu0 %476 }
 0x1e6   : > { %v725_v32 = vpack.c.bf16 %v383_v27, %v471_v31 }
 0x1e8   : > { %726 = vmatpush3.bf16.msra.mxu0 %v725_v32  ;;  %v473_v33 = vpop.permute.xlu1 %472 }
 0x1e9   : > { %713 = vmatprep.subr.mxu0 %v876_v1  ;;  %v479_v36 = vsel %vm302_vm2, %v473_v33, %v477_v34 }
 0x1ec   : > { %714 = vmatpush3.msra.mxu0 %v479_v36 }
 0x1ed   : > { %716 = vmatmul.mubr.msk.f32.vlgmr.msra.gmra.mrb[2].mxu0 %vm309_vm3, %v276_v35 }
 0x1f9   : > { %v483_v37 = vpop.permute.xlu1 %482 }
 0x1fa   : > { %v485_v38 = vadd.f32 %v483_v37, %v982_v3 }
 0x2c0   : > { %v555_v39 = vpop.f32.mrb[2].mxu0 }
 0x2c1   : > { %v556_v40 = vadd.f32 %v555_v39, %v485_v38  ;;  %v717_v41 = vpop.f32.mrb[3].mxu0 }
 0x2c3   : > { %v559_v42 = vmax.f32 %v556_v40, 0.0 }
 0x2c5   : > { %561 = vst.msk [vmem:[%s258_s17] sm:$0xff] %vm560_vm4, %v559_v42 }
 0x2c6   : > { %807 = shalt.err (!%p804_p5)
}
 0x2c7   : > { %s808_s11 = scalar_lea.hbm %s1026_s29, 128  ;;  %s812_s14 = scalar_lea.hbm %s1078_s5, 256 }
 0x2c8   : > { %p809_p6 = scmp.ne.s32.totalorder %s1026_s29, %s808_s11  ;;  %p813_p10 = scmp.lt.u32.totalorder %s1026_s29, %s1078_s5 }
 0x2c9   : > { %p814_p11 = scmp.lt.u32.totalorder %s812_s14, %s808_s11  ;;  %p816_p13 = scmp.lt.u32.totalorder %s808_s11, %s1026_s29 }
 0x2ca   : > { %p810_p7 = pnand %p809_p6, %p955_p4 }
 0x2cb   : > { %p815_p12 = por %p814_p11, %p813_p10 }
 0x2cc   : > { %p811_p9 = pneg %p810_p7 }
 0x2cd   : > { %p817_p0 = por %p816_p13, %p815_p12 }
 0x2cf   : > { %p818_p1 = pnand %p817_p0, %p811_p9 }
 0x2d1   : > { %821 = shalt.err (!%p818_p1)
}
 0x2d2   : > { %727 = dma.vmem_to_hbm [thread:$0]  (%p955_p4), %s1028_s24, 128, %s1026_s29, %s563_s7  }
 0x2d3 PF: > { %p733_p2 = scmp.ge.s32.totalorder %s872_s23, 2  ;;  %s589_s17 = sand.u32 1, %s852_s18  }
 0x2d4   : > { %s590_s25 = scalar_lea.sflag [#allocation3], %s589_s17 }
 0x2d5   : > { %p730_p3 = pnand %p733_p2, %p962_p8 }
 0x2d7   : > { %847 = dma.done.wait (!%p730_p3), %s590_s25, 128  }
 0x2d8   : > { %849 = vsyncadd (!%p730_p3), %s590_s25, 4294967168  ;;  %s18_s23 = sadd.s32 1, %s872_s23   ;;  %s1081_s18 = smov %s856_s19 }
 0x2d9   : > { %p15_p5 = scmp.ge.s32.totalorder %s18_s23, 4   ;;  %s1082_s19 = smov %s860_s20 }
 0x2da   : > { %s1083_s20 = smov %s968_s6  ;;  %s1084_s21 = smov %s868_s22 }
 0x2db   : > { %s1085_s22 = smov %s1087_s26  ;;  %17 = sbr.rel (!%p15_p5) target bundleno = 4 (0x4), region = 79 }
 0x2e2   :  { %595 = vsyncpa [#allocation3], 1 }
 0x2e3   :  { %597 = vsyncpa [#allocation3 + $0x1], 1 }

</bundles_post_ra>
